<compile_context>
chip_gen: v7x
topology: tpu7x:2x2x1
jax: 0.10.0
libtpu: 0.0.40
codegen_flags: <defaults>
</compile_context>

<pallas_src>
import functools

import jax
import jax.numpy as jnp
from jax.experimental import pallas as pl
from jax.experimental.pallas import tpu as pltpu


def _round_up(n, m):
    return ((n + m - 1) // m) * m


def dqn_kernel(x_ref, w1_ref, b1_ref, w2_ref, b2_ref, o_ref):
    # Two tiny matmuls + sigmoid + tanh, all accumulated in f32 on-chip.
    # Inputs may be bf16 in HBM (halves read bytes on v6e/v7x); upcast here.
    x = x_ref[...].astype(jnp.float32)            # (TM, 9)
    w1 = w1_ref[...].astype(jnp.float32)          # (9, 32)
    b1 = b1_ref[...].astype(jnp.float32)          # (1, 32)
    w2 = w2_ref[...].astype(jnp.float32)          # (32, 128)  lane-dense, zero-padded
    b2 = b2_ref[...].astype(jnp.float32)          # (1, 128)   zero-padded

    h = jnp.dot(x, w1, preferred_element_type=jnp.float32) + b1   # (TM, 32)
    h = jax.nn.sigmoid(h)                                         # EUP exp
    y = jnp.dot(h, w2, preferred_element_type=jnp.float32) + b2   # (TM, 128)
    o_ref[...] = jnp.tanh(y).astype(o_ref.dtype)                  # EUP tanh


@functools.partial(jax.jit, static_argnames=("tm",))
def dqn_forward(x, w1, b1, w2, b2, *, tm=512):
    """Forward pass of the DQN MLP. x: (B, 9) -> (B, 9)."""
    B, in_f = x.shape
    hidden = w1.shape[1]
    out_f = w2.shape[1]
    LANE = 128

    # ---- lane-dense padding of the second layer / output ------------------
    out_pad = _round_up(max(out_f, LANE), LANE)
    w2p = jnp.zeros((hidden, out_pad), w2.dtype).at[:, :out_f].set(w2)
    b2p = jnp.zeros((1, out_pad), b2.dtype).at[:, :out_f].set(b2)

    # ---- batch tiling ------------------------------------------------------
    # TM bounded at `tm` rows (pipelined for big B), shrunk to the (8-aligned)
    # batch for tiny B so we don't pad a toy batch up to 512 rows.
    tm_eff = min(tm, _round_up(B, 8))
    b_pad = _round_up(B, tm_eff)
    if b_pad != B:
        x = jnp.pad(x, ((0, b_pad - B), (0, 0)))

    grid = (b_pad // tm_eff,)

    out = pl.pallas_call(
        dqn_kernel,
        out_shape=jax.ShapeDtypeStruct((b_pad, out_pad), x.dtype),
        grid=grid,
        in_specs=[
            # activations: one batch tile per grid step
            pl.BlockSpec((tm_eff, in_f), lambda i: (i, 0)),
            # parameters: same block every step -> stay resident in VMEM
            pl.BlockSpec((in_f, hidden), lambda i: (0, 0)),
            pl.BlockSpec((1, hidden), lambda i: (0, 0)),
            pl.BlockSpec((hidden, out_pad), lambda i: (0, 0)),
            pl.BlockSpec((1, out_pad), lambda i: (0, 0)),
        ],
        out_specs=pl.BlockSpec((tm_eff, out_pad), lambda i: (i, 0)),
        compiler_params=pltpu.CompilerParams(
            # batch tiles are independent -> shard across TCs on v7x
            dimension_semantics=("parallel",),
            vmem_limit_bytes=64 * 1024 * 1024,
        ),
    )(x, w1, b1, w2p, b2p)

    # strip batch padding and the lane padding of the output features
    return out[:B, :out_f]


def init_params(key, in_f=9, hidden=32, out_f=9, dtype=jnp.float32):
    # Deterministic init mimicking torch.nn.Linear default
    # (U[-1/sqrt(fan_in), 1/sqrt(fan_in)]), weights pre-transposed to (in, out).
    k1, k2, k3, k4 = jax.random.split(key, 4)
    lim1 = 1.0 / jnp.sqrt(jnp.float32(in_f))
    lim2 = 1.0 / jnp.sqrt(jnp.float32(hidden))
    w1 = jax.random.uniform(k1, (in_f, hidden), dtype, -lim1, lim1)
    b1 = jax.random.uniform(k2, (1, hidden), dtype, -lim1, lim1)
    w2 = jax.random.uniform(k3, (hidden, out_f), dtype, -lim2, lim2)
    b2 = jax.random.uniform(k4, (1, out_f), dtype, -lim2, lim2)
    return w1, b1, w2, b2


if __name__ == "__main__":
    key = jax.random.PRNGKey(0)
    kx, kp = jax.random.split(key)

    B, IN_F, HID, OUT_F = 8, 9, 32, 9
    x = jax.random.normal(kx, (B, IN_F), jnp.float32)
    w1, b1, w2, b2 = init_params(kp, IN_F, HID, OUT_F)

    out = dqn_forward(x, w1, b1, w2, b2)
    jax.block_until_ready(out)

    # Pure-JAX reference check.
    ref = jnp.tanh(jnp.dot(jax.nn.sigmoid(jnp.dot(x, w1) + b1), w2) + b2)
    assert out.shape == (B, OUT_F)
    assert jnp.allclose(out, ref, atol=1e-5, rtol=1e-5)

    # Also exercise the pipelined multi-tile path (B > TM, non-multiple batch).
    B2 = 1300
    x2 = jax.random.normal(jax.random.PRNGKey(1), (B2, IN_F), jnp.float32)
    out2 = dqn_forward(x2, w1, b1, w2, b2)
    jax.block_until_ready(out2)
    ref2 = jnp.tanh(jnp.dot(jax.nn.sigmoid(jnp.dot(x2, w1) + b1), w2) + b2)
    assert out2.shape == (B2, OUT_F)
    assert jnp.allclose(out2, ref2, atol=1e-5, rtol=1e-5)

    print("KERNEL_OK")
</pallas_src>

<mosaic_0001>
module attributes {stable_mosaic.version = 11 : i64} {
  func.func @dqn_kernel(%arg0: i32, %arg1: memref<8x9xf32, #tpu.memory_space<vmem>>, %arg2: memref<9x32xf32, #tpu.memory_space<vmem>>, %arg3: memref<1x32xf32, #tpu.memory_space<vmem>>, %arg4: memref<32x128xf32, #tpu.memory_space<vmem>>, %arg5: memref<1x128xf32, #tpu.memory_space<vmem>>, %arg6: memref<8x128xf32, #tpu.memory_space<vmem>>) attributes {dimension_semantics = [#tpu.dimension_semantics<parallel>], iteration_bounds = array<i64: 1>, scalar_prefetch = 0 : i64, scratch_operands = 0 : i64, tpu.core_type = #tpu.core_type<tc>, window_params = [{transform_indices = @transform_0, window_bounds = array<i64: 8, 9>}, {pipeline_mode = #tpu.pipeline_mode<synchronous>, transform_indices = @transform_1, window_bounds = array<i64: 9, 32>}, {pipeline_mode = #tpu.pipeline_mode<synchronous>, transform_indices = @transform_2, window_bounds = array<i64: 1, 32>}, {pipeline_mode = #tpu.pipeline_mode<synchronous>, transform_indices = @transform_3, window_bounds = array<i64: 32, 128>}, {pipeline_mode = #tpu.pipeline_mode<synchronous>, transform_indices = @transform_4, window_bounds = array<i64: 1, 128>}, {transform_indices = @transform_5, window_bounds = array<i64: 8, 128>}]} {
    %c0 = arith.constant 0 : index
    %c0_0 = arith.constant 0 : index
    %0 = vector.load %arg1[%c0, %c0_0] : memref<8x9xf32, #tpu.memory_space<vmem>>, vector<8x9xf32>
    %c0_1 = arith.constant 0 : index
    %c0_2 = arith.constant 0 : index
    %1 = vector.load %arg2[%c0_1, %c0_2] : memref<9x32xf32, #tpu.memory_space<vmem>>, vector<9x32xf32>
    %c0_3 = arith.constant 0 : index
    %c0_4 = arith.constant 0 : index
    %2 = vector.load %arg3[%c0_3, %c0_4] : memref<1x32xf32, #tpu.memory_space<vmem>>, vector<1x32xf32>
    %c0_5 = arith.constant 0 : index
    %c0_6 = arith.constant 0 : index
    %3 = vector.load %arg4[%c0_5, %c0_6] : memref<32x128xf32, #tpu.memory_space<vmem>>, vector<32x128xf32>
    %c0_7 = arith.constant 0 : index
    %c0_8 = arith.constant 0 : index
    %4 = vector.load %arg5[%c0_7, %c0_8] : memref<1x128xf32, #tpu.memory_space<vmem>>, vector<1x128xf32>
    %cst = arith.constant dense<0.000000e+00> : vector<8x32xf32>
    %5 = tpu.matmul %0, %1, %cst {dimension_numbers = #tpu.dot_dimension_numbers<[1], [0], [0], [1], [0, 0, 1, 1], [], []>} : vector<8x9xf32>, vector<9x32xf32>, vector<8x32xf32> -> vector<8x32xf32>
    %6 = vector.broadcast %2 : vector<1x32xf32> to vector<8x32xf32>
    %7 = arith.addf %5, %6 : vector<8x32xf32>
    %8 = arith.negf %7 : vector<8x32xf32>
    %9 = math.exp %8 : vector<8x32xf32>
    %cst_9 = arith.constant 1.000000e+00 : f32
    %10 = vector.broadcast %cst_9 : f32 to vector<8x32xf32>
    %11 = arith.addf %10, %9 : vector<8x32xf32>
    %12 = arith.divf %10, %11 : vector<8x32xf32>
    %cst_10 = arith.constant dense<0.000000e+00> : vector<8x128xf32>
    %13 = tpu.matmul %12, %3, %cst_10 {dimension_numbers = #tpu.dot_dimension_numbers<[1], [0], [0], [1], [0, 0, 1, 1], [], []>} : vector<8x32xf32>, vector<32x128xf32>, vector<8x128xf32> -> vector<8x128xf32>
    %14 = vector.broadcast %4 : vector<1x128xf32> to vector<8x128xf32>
    %15 = arith.addf %13, %14 : vector<8x128xf32>
    %16 = math.tanh %15 : vector<8x128xf32>
    %c0_11 = arith.constant 0 : index
    %c0_12 = arith.constant 0 : index
    %17 = vector.load %arg6[%c0_11, %c0_12] : memref<8x128xf32, #tpu.memory_space<vmem>>, vector<8x128xf32>
    tpu.vector_store %arg6[%c0_11, %c0_12], %16 {strides = array<i32>} : memref<8x128xf32, #tpu.memory_space<vmem>>, vector<8x128xf32>,
    return
  }
  func.func @transform_0(%arg0: i32) -> (i32, i32) {
    %c0_i32 = arith.constant 0 : i32
    %c0_i32_0 = arith.constant 0 : i32
    return %arg0, %c0_i32 : i32, i32
  }
  func.func @transform_1(%arg0: i32) -> (i32, i32) {
    %c0_i32 = arith.constant 0 : i32
    %c0_i32_0 = arith.constant 0 : i32
    %c0_i32_1 = arith.constant 0 : i32
    return %c0_i32, %c0_i32_0 : i32, i32
  }
  func.func @transform_2(%arg0: i32) -> (i32, i32) {
    %c0_i32 = arith.constant 0 : i32
    %c0_i32_0 = arith.constant 0 : i32
    %c0_i32_1 = arith.constant 0 : i32
    return %c0_i32, %c0_i32_0 : i32, i32
  }
  func.func @transform_3(%arg0: i32) -> (i32, i32) {
    %c0_i32 = arith.constant 0 : i32
    %c0_i32_0 = arith.constant 0 : i32
    %c0_i32_1 = arith.constant 0 : i32
    return %c0_i32, %c0_i32_0 : i32, i32
  }
  func.func @transform_4(%arg0: i32) -> (i32, i32) {
    %c0_i32 = arith.constant 0 : i32
    %c0_i32_0 = arith.constant 0 : i32
    %c0_i32_1 = arith.constant 0 : i32
    return %c0_i32, %c0_i32_0 : i32, i32
  }
  func.func @transform_5(%arg0: i32) -> (i32, i32) {
    %c0_i32 = arith.constant 0 : i32
    %c0_i32_0 = arith.constant 0 : i32
    return %arg0, %c0_i32 : i32, i32
  }
}

</mosaic_0001>

<bundles_post_ra>
// kernel: dqn_forward.1
= control target key start
LH: loop header
LB: loop body
LE: loop exit
PB: predicated region body
PF: predicated region fallthrough
CT: control target
= control target key end

     0   :  { %10 = vsyncpa [#allocation3], 0  ;;  %s595_s0 = inlined_call_operand.hbm [shape: f32[8,9], index: 0, kind: input, shape index: {}]   ;;  %s596_s1 = inlined_call_operand.hbm [shape: f32[9,32], index: 1, kind: input, shape index: {}]   ;;  %s597_s2 = inlined_call_operand.hbm [shape: f32[1,32], index: 2, kind: input, shape index: {}]   ;;  %s598_s3 = inlined_call_operand.hbm [shape: f32[32,128], index: 3, kind: input, shape index: {}]   ;;  %s599_s4 = inlined_call_operand.hbm [shape: f32[1,128], index: 4, kind: input, shape index: {}]   ;;  %s600_s5 = inlined_call_operand.hbm [shape: f32[8,128], index: 5, kind: output, shape index: {}]  }
   0x1   :  { %11 = vsyncpa [#allocation6], 0 }
   0x2   :  { %12 = vsyncpa [#allocation9], 0 }
   0x3   :  { %13 = vsyncpa [#allocation4], 0  ;;  %s481_s18 = smov [#allocation5]   ;;  %s341_s22 = scalar_lea.hbm %s596_s1, 256 }
   0x4   :  { %s29_s19 = sshll.u32 %s481_s18, 4  ;;  %p342_p0 = scmp.ne.s32.totalorder %s596_s1, %s341_s22  ;;  %s30_s19 = int_to_ptr.vmem [resolvable:$true] %s29_s19 }
   0x5   :  { %p345_p1 = scmp.lt.u32.totalorder %s341_s22, %s596_s1 }
   0x7   :  { %p347_p2 = pnand %p345_p1, %p342_p0 }
   0x9   :  { %350 = shalt.err (!%p347_p2)
}
   0xa   :  { %s351_s27 = scalar_lea.vmem %s30_s19, 256  ;;  %p356_p4 = scmp.lt.s32.totalorder %s30_s19, %s30_s19 }
   0xb   :  { %p352_p3 = scmp.ne.s32.totalorder %s30_s19, %s351_s27  ;;  %p357_p5 = scmp.lt.s32.totalorder %s351_s27, %s351_s27 }
   0xd   :  { %p358_p6 = por %p357_p5, %p356_p4 }
   0xf   :  { %p359_p7 = pnand %p358_p6, %p352_p3 }
  0x11   :  { %362 = shalt.err (!%p359_p7)
}
  0x12   :  { %s482_s28 = smov 128   ;;  %s483_s29 = smov 8  }
  0x13   :  { %35 = dma.hbm_to_vmem [thread:$0]  %s596_s1, 256, %s30_s19, [#allocation6], %s482_s28, %s482_s28, %s483_s29  }
  0x14   :  { %s484_s7 = smov [#allocation8]   ;;  %s485_s9 = smov [#allocation2]  }
  0x15   :  { %s51_s8 = sshll.u32 %s484_s7, 4  ;;  %s20_s10 = sshll.u32 %s485_s9, 4  ;;  %s52_s8 = int_to_ptr.vmem [resolvable:$true] %s51_s8  ;;  %s21_s10 = int_to_ptr.vmem [resolvable:$true] %s20_s10 }
  0x16   :  { %s363_s13 = scalar_lea.hbm %s598_s3, 512 }
  0x17   :  { %p364_p8 = scmp.ne.s32.totalorder %s598_s3, %s363_s13  ;;  %p367_p9 = scmp.lt.u32.totalorder %s363_s13, %s598_s3 }
  0x19   :  { %p369_p10 = pnand %p367_p9, %p364_p8 }
  0x1b   :  { %372 = shalt.err (!%p369_p10)
}
  0x1c   :  { %s373_s1 = scalar_lea.vmem %s52_s8, 512  ;;  %p378_p12 = scmp.lt.s32.totalorder %s52_s8, %s52_s8 }
  0x1d   :  { %p374_p11 = scmp.ne.s32.totalorder %s52_s8, %s373_s1  ;;  %p379_p13 = scmp.lt.s32.totalorder %s373_s1, %s373_s1 }
  0x1f   :  { %p380_p0 = por %p379_p13, %p378_p12 }
  0x21   :  { %p381_p1 = pnand %p380_p0, %p374_p11 }
  0x23   :  { %384 = shalt.err (!%p381_p1)
}
  0x24   :  { %57 = dma.hbm_to_vmem [thread:$0]  %s598_s3, 512, %s52_s8, [#allocation9], %s482_s28, %s482_s28, %s483_s29  }
  0x25   :  { %s385_s22 = scalar_lea.hbm %s595_s0, 128 }
  0x26   :  { %p386_p2 = scmp.ne.s32.totalorder %s595_s0, %s385_s22  ;;  %p389_p3 = scmp.lt.u32.totalorder %s385_s22, %s595_s0 }
  0x28   :  { %p391_p4 = pnand %p389_p3, %p386_p2 }
  0x2a   :  { %394 = shalt.err (!%p391_p4)
}
  0x2b   :  { %s395_s27 = scalar_lea.vmem %s21_s10, 128  ;;  %p400_p6 = scmp.lt.s32.totalorder %s21_s10, %s21_s10 }
  0x2c   :  { %p396_p5 = scmp.ne.s32.totalorder %s21_s10, %s395_s27  ;;  %p401_p7 = scmp.lt.s32.totalorder %s395_s27, %s395_s27 }
  0x2e   :  { %p402_p8 = por %p401_p7, %p400_p6 }
  0x30   :  { %p403_p9 = pnand %p402_p8, %p396_p5 }
  0x32   :  { %406 = shalt.err (!%p403_p9)
}
  0x33   :  { %23 = dma.hbm_to_vmem [thread:$0]  %s595_s0, 128, %s21_s10, [#allocation3]  }
  0x34   :  { %s486_s29 = smov [#allocation7]   ;;  %s487_s6 = smov [#allocation10]  }
  0x35   :  { %s42_s30 = sshll.u32 %s486_s29, 4  ;;  %s64_s7 = sshll.u32 %s487_s6, 4  ;;  %s43_s30 = int_to_ptr.vmem [resolvable:$true] %s42_s30  ;;  %s65_s7 = int_to_ptr.vmem [resolvable:$true] %s64_s7 }
  0x36   :  { %s407_s11 = scalar_lea.hbm %s597_s2, 16 }
  0x37   :  { %p408_p10 = scmp.ne.s32.totalorder %s597_s2, %s407_s11  ;;  %p411_p11 = scmp.lt.u32.totalorder %s407_s11, %s597_s2 }
  0x39   :  { %p413_p12 = pnand %p411_p11, %p408_p10 }
  0x3b   :  { %416 = shalt.err (!%p413_p12)
}
  0x3c   :  { %s417_s0 = scalar_lea.vmem %s43_s30, 16  ;;  %s421_s10 = scalar_lea.vmem %s43_s30, 32 }
  0x3d   :  { %p418_p13 = scmp.ne.s32.totalorder %s43_s30, %s417_s0  ;;  %p422_p0 = scmp.lt.s32.totalorder %s43_s30, %s43_s30 }
  0x3e   :  { %p423_p1 = scmp.lt.s32.totalorder %s421_s10, %s417_s0 }
  0x40   :  { %p424_p2 = por %p423_p1, %p422_p0 }
  0x42   :  { %p425_p3 = pnand %p424_p2, %p418_p13 }
  0x44   :  { %428 = shalt.err (!%p425_p3)
}
  0x45   :  { %45 = dma.hbm_to_vmem [thread:$0]  %s597_s2, 16, %s43_s30, [#allocation6]  }
  0x46   :  { %s429_s19 = scalar_lea.hbm %s599_s4, 16 }
  0x47   :  { %p430_p4 = scmp.ne.s32.totalorder %s599_s4, %s429_s19  ;;  %p433_p5 = scmp.lt.u32.totalorder %s429_s19, %s599_s4 }
  0x49   :  { %p435_p6 = pnand %p433_p5, %p430_p4 }
  0x4b   :  { %438 = shalt.err (!%p435_p6)
}
  0x4c   :  { %s439_s24 = scalar_lea.vmem %s65_s7, 16  ;;  %s443_s25 = scalar_lea.vmem %s65_s7, 32 }
  0x4d   :  { %p440_p7 = scmp.ne.s32.totalorder %s65_s7, %s439_s24  ;;  %p444_p8 = scmp.lt.s32.totalorder %s65_s7, %s65_s7 }
  0x4e   :  { %p445_p9 = scmp.lt.s32.totalorder %s443_s25, %s439_s24 }
  0x50   :  { %p446_p10 = por %p445_p9, %p444_p8 }
  0x52   :  { %p447_p11 = pnand %p446_p10, %p440_p7 }
  0x54   :  { %450 = shalt.err (!%p447_p11)
}
  0x55   :  { %67 = dma.hbm_to_vmem [thread:$0]  %s599_s4, 16, %s65_s7, [#allocation9]  }
  0x56   :  { %473 = dma.done.wait [#allocation3], 128  }
  0x57   :  { %474 = vsyncadd [#allocation3], 4294967168 }
  0x58   :  { %475 = dma.done.wait [#allocation6], 272  }
  0x59   :  { %476 = vsyncadd [#allocation6], 4294967024 }
  0x5a   :  { %477 = dma.done.wait [#allocation9], 528  }
  0x5b   :  { %478 = vsyncadd [#allocation9], 4294966768  ;;  %v488_v0 = vmov 0.0|0.0   ;;  %vm489_vm0 = vmmov 0   ;;  %v490_v1 = vmov 0.0   ;;  %vm102_vm1 = vcmask 1040384  }
  0x5c   :  { %313 = vmatprep.subr.bf16.mxu0 %v488_v0  ;;  %317 = vmatprep.subr.bf16.mxu1 %v488_v0  ;;  %v84_v2 = vld [vmem:[#allocation5] sm:$0xff]  ;;  %v85_v3 = vld [vmem:[#allocation5 + $0x8] sm:$0x1]  ;;  %vm491_vm2 = vmmov 1   ;;  %v83_v5 = vld [vmem:[#allocation2] sm:$0xff]  ;;  %vm98_vm4 = vcmask 72704  }
  0x5d   :  { %299 = vmatprep.mubr.msk.f32.mxu0 %vm489_vm0, %v490_v1  ;;  %310 = vmatprep.mubr.msk.f32.mxu1 %vm489_vm0, %v490_v1  ;;  %vm315_vm3 = vmpackc.low %vm102_vm1, %vm491_vm2  ;;  %v314_v4 = vpack.c.bf16 %v85_v3, %v84_v2  ;;  %v87_v6 = vld [vmem:[#allocation8] sm:$0xff]  ;;  %v88_v7 = vld [vmem:[#allocation8 + $0x8] sm:$0xff]  ;;  %vm188_vm5 = vcmask 261120   ;;  %s492_s4 = smov [#allocation11]  }
  0x5e   :  { %v89_v8 = vld [vmem:[#allocation8 + $0x10] sm:$0xff]  ;;  %v318_v9 = vpack.c.bf16 %v88_v7, %v87_v6  ;;  %v90_v10 = vld [vmem:[#allocation8 + $0x18] sm:$0xff]  ;;  %v285_v20 = vld [vmem:[#allocation10] ss:$0 sm:$0xff]  ;;  %s270_s27 = sshll.u32 %s492_s4, 4  ;;  %s271_s27 = int_to_ptr.vmem [resolvable:$true] %s270_s27 }
  0x5f   :  { %316 = vmatpush3.bf16.msk.msra.mxu0 %vm315_vm3, %v314_v4  ;;  %v321_v11 = vpack.c.bf16 %v90_v10, %v89_v8  ;;  %v281_v12 = vld [vmem:[#allocation7] ss:$0 sm:$0xff]  ;;  %s451_s3 = scalar_lea.vmem %s271_s27, 128  ;;  %p456_p13 = scmp.lt.s32.totalorder %s271_s27, %s271_s27 }
  0x60   :  { %319 = vmatpush3.bf16.msra.mxu1 %v318_v9  ;;  %p452_p12 = scmp.ne.s32.totalorder %s271_s27, %s451_s3  ;;  %p457_p0 = scmp.lt.s32.totalorder %s451_s3, %s451_s3 }
  0x61   :  { %320 = vmatprep.subr.bf16.mxu1 %v488_v0 }
  0x62   :  { %300 = vmatmul.mubr.msk.f32.vlgmr.msra.gmra.mrb[0].mxu0 %vm98_vm4, %v83_v5  ;;  %p458_p1 = por %p457_p0, %p456_p13 }
  0x64   :  { %322 = vmatpush3.bf16.msra.mxu1 %v321_v11  ;;  %p459_p2 = pnand %p458_p1, %p452_p12 }
 0x135   :  { %v172_v13 = vpop.f32.mrb[0].mxu0 }
 0x136   :  { %v173_v14 = vadd.f32 %v281_v12, %v172_v13  ;;  %v301_v15 = vpop.f32.mrb[1].mxu0 }
 0x138   :  { %v284_v16 = vmul.f32 -1.442695, %v173_v14 }
 0x13a   :  { %335 = vpow2.f32 %v284_v16 }
 0x144   :  { %v336_v17 = vpop.eup %335 }
 0x145   :  { %v179_v18 = vadd.f32 1.0, %v336_v17 }
 0x147   :  { %337 = vrcp.f32 %v179_v18 }
 0x151   :  { %v338_v19 = vpop.eup %337 }
 0x152   :  { %311 = vmatmul.mubr.msk.f32.vlgmr.msra.gmra.mrb[0].mxu1 %vm188_vm5, %v338_v19 }
 0x225   :  { %v258_v21 = vpop.f32.mrb[0].mxu1 }
 0x226   :  { %v259_v22 = vadd.f32 %v285_v20, %v258_v21  ;;  %v312_v23 = vpop.f32.mrb[1].mxu1 }
 0x228   :  { %339 = vtanh.f32 %v259_v22 }
 0x232   :  { %v340_v24 = vpop.eup %339 }
 0x233   :  { %263 = vst [vmem:[#allocation11] sm:$0xff] %v340_v24 }
 0x234   :  { %462 = shalt.err (!%p459_p2)
}
 0x235   :  { %s463_s30 = scalar_lea.hbm %s600_s5, 128 }
 0x236   :  { %p464_p3 = scmp.ne.s32.totalorder %s600_s5, %s463_s30  ;;  %p467_p4 = scmp.lt.u32.totalorder %s463_s30, %s600_s5 }
 0x238   :  { %p469_p5 = pnand %p467_p4, %p464_p3 }
 0x23a   :  { %472 = shalt.err (!%p469_p5)
}
 0x23b   :  { %273 = dma.vmem_to_hbm [thread:$0]  %s271_s27, 128, %s600_s5, [#allocation4]  }
 0x23c   :  { %479 = dma.done.wait [#allocation4], 128  }
 0x23d   :  { %480 = vsyncadd [#allocation4], 4294967168 }
 0x23e   :  { %277 = vsyncpa [#allocation3], 1 }
 0x23f   :  { %278 = vsyncpa [#allocation6], 1 }
 0x240   :  { %279 = vsyncpa [#allocation9], 1 }
 0x241   :  { %280 = vsyncpa [#allocation4], 1 }

</bundles_post_ra>
